<compile_context>
chip_gen: v6e
topology: v6e:2x2x1
jax: 0.10.0
libtpu: 0.0.40
codegen_flags: <defaults>
</compile_context>

<pallas_src>
import functools

import jax
import jax.numpy as jnp
import numpy as np
from jax.experimental import pallas as pl
from jax.experimental.pallas import tpu as pltpu

_LANE = 128
_SUBLANE = 8


def _round_up(v, m):
    return (v + m - 1) // m * m


def maxout_kernel(x_ref, w_ref, b_ref, o_ref, *, num_branches, n_pad):
    """One grid step = one batch tile; all K branches handled in one matmul.

    x_ref : (tm, Dp)        batch tile of the (D-padded) input
    w_ref : (Dp, K*Np)      folded weights; branch k = columns [k*Np, (k+1)*Np)
    b_ref : (1, K*Np)       folded biases
    o_ref : (tm, Np)        lane-dense maxout output tile
    """
    # Single MXU matmul covering every branch (N_eff = K*Np columns).
    z = jnp.dot(x_ref[...], w_ref[...], preferred_element_type=jnp.float32)
    z = z + b_ref[...]  # (1, K*Np) broadcasts over rows; VPU add.

    # Max across branches: static, lane-aligned column slices (Np % 128 == 0),
    # running max kept in f32 and cast once at the final store.
    h = z[:, 0:n_pad]
    for k in range(1, num_branches):
        h = jnp.maximum(h, z[:, k * n_pad:(k + 1) * n_pad])

    o_ref[...] = h.astype(o_ref.dtype)


def maxout_mlp(x, weights, biases, *, block_b=256):
    """x: (B, D) f32; weights: (K, D, N) f32; biases: (K, N) f32 -> (B, N) f32.

    weights[k] is the transposed torch Linear weight (W_k.T), so branch k
    computes x @ weights[k] + biases[k]; the result is max over k.
    """
    B, D = x.shape
    K, D2, N = weights.shape
    assert D == D2 and biases.shape == (K, N)

    # Lane-dense per-branch output width, sublane-aligned contraction dim,
    # and batch tiling.
    Np = _round_up(N, _LANE)
    Dp = _round_up(D, _SUBLANE)
    tm = min(_round_up(B, _SUBLANE), _round_up(block_b, _SUBLANE))
    Bp = _round_up(B, tm)

    # Fold K branches into the matmul's N dimension: (K, D, N) -> (Dp, K*Np).
    w_f = jnp.transpose(weights, (1, 0, 2))                       # (D, K, N)
    w_f = jnp.pad(w_f, ((0, Dp - D), (0, 0), (0, Np - N)))        # (Dp, K, Np)
    w_f = w_f.reshape(Dp, K * Np)
    b_f = jnp.pad(biases, ((0, 0), (0, Np - N))).reshape(1, K * Np)

    x_p = x
    if (Bp, Dp) != (B, D):
        x_p = jnp.pad(x, ((0, Bp - B), (0, Dp - D)))

    kernel = functools.partial(maxout_kernel, num_branches=K, n_pad=Np)

    # Only raise the scoped-VMEM limit when the working set actually needs it
    # (double-buffered x/out tiles + resident weight/bias slab + headroom).
    bytes_f32 = 4
    vmem_need = (2 * tm * Dp + Dp * K * Np + K * Np + 2 * tm * Np) * bytes_f32
    compiler_kwargs = dict(dimension_semantics=("parallel",))
    if vmem_need > 24 * 1024 * 1024:
        compiler_kwargs["vmem_limit_bytes"] = min(
            int(vmem_need * 1.5), 100 * 1024 * 1024)

    out = pl.pallas_call(
        kernel,
        out_shape=jax.ShapeDtypeStruct((Bp, Np), jnp.float32),
        grid_spec=pltpu.PrefetchScalarGridSpec(
            num_scalar_prefetch=0,
            grid=(Bp // tm,),
            in_specs=[
                pl.BlockSpec((tm, Dp), lambda i: (i, 0)),        # x batch tile
                pl.BlockSpec((Dp, K * Np), lambda i: (0, 0)),    # folded weights (resident)
                pl.BlockSpec((1, K * Np), lambda i: (0, 0)),     # folded biases (resident)
            ],
            out_specs=pl.BlockSpec((tm, Np), lambda i: (i, 0)),  # lane-dense output
        ),
        compiler_params=pltpu.CompilerParams(**compiler_kwargs),
    )(x_p, w_f, b_f)

    return out[:B, :N]


def maxout_mlp_ref(x, weights, biases):
    """Pure-JAX reference matching the PyTorch forward (is_norm=False)."""
    z = jnp.einsum("bd,kdn->kbn", x, weights) + biases[:, None, :]
    return jnp.max(z, axis=0)


if __name__ == "__main__":
    # Module hyper-params (small, consistent with MaxoutMLP.__init__)
    input_size = 32       # D
    linear_layers = 3     # K branches
    linear_neurons = 32   # N
    batch = 8             # B

    key = jax.random.PRNGKey(0)
    kx, kw, kb = jax.random.split(key, 3)

    # Deterministic parameter init (mimics torch.nn.Linear uniform(-1/sqrt(D), 1/sqrt(D)))
    bound = 1.0 / np.sqrt(input_size)
    x = jax.random.normal(kx, (batch, input_size), dtype=jnp.float32)
    weights = jax.random.uniform(
        kw, (linear_layers, input_size, linear_neurons),
        dtype=jnp.float32, minval=-bound, maxval=bound)
    biases = jax.random.uniform(
        kb, (linear_layers, linear_neurons),
        dtype=jnp.float32, minval=-bound, maxval=bound)

    out = maxout_mlp(x, weights, biases)
    out = jax.block_until_ready(out)

    ref = maxout_mlp_ref(x, weights, biases)
    np.testing.assert_allclose(np.asarray(out), np.asarray(ref), rtol=1e-5, atol=1e-5)

    print("KERNEL_OK")
</pallas_src>

<mosaic_0001>
module attributes {stable_mosaic.version = 11 : i64} {
  func.func @maxout_kernel(%arg0: i32, %arg1: memref<8x32xf32, #tpu.memory_space<vmem>>, %arg2: memref<32x384xf32, #tpu.memory_space<vmem>>, %arg3: memref<1x384xf32, #tpu.memory_space<vmem>>, %arg4: memref<8x128xf32, #tpu.memory_space<vmem>>) attributes {dimension_semantics = [#tpu.dimension_semantics<parallel>], iteration_bounds = array<i64: 1>, scalar_prefetch = 0 : i64, scratch_operands = 0 : i64, tpu.core_type = #tpu.core_type<tc>, window_params = [{transform_indices = @transform_0, window_bounds = array<i64: 8, 32>}, {pipeline_mode = #tpu.pipeline_mode<synchronous>, transform_indices = @transform_1, window_bounds = array<i64: 32, 384>}, {pipeline_mode = #tpu.pipeline_mode<synchronous>, transform_indices = @transform_2, window_bounds = array<i64: 1, 384>}, {transform_indices = @transform_3, window_bounds = array<i64: 8, 128>}]} {
    %c0 = arith.constant 0 : index
    %c0_0 = arith.constant 0 : index
    %0 = vector.load %arg1[%c0, %c0_0] : memref<8x32xf32, #tpu.memory_space<vmem>>, vector<8x32xf32>
    %c0_1 = arith.constant 0 : index
    %c0_2 = arith.constant 0 : index
    %1 = vector.load %arg2[%c0_1, %c0_2] : memref<32x384xf32, #tpu.memory_space<vmem>>, vector<32x384xf32>
    %cst = arith.constant dense<0.000000e+00> : vector<8x384xf32>
    %2 = tpu.matmul %0, %1, %cst {dimension_numbers = #tpu.dot_dimension_numbers<[1], [0], [0], [1], [0, 0, 1, 1], [], []>} : vector<8x32xf32>, vector<32x384xf32>, vector<8x384xf32> -> vector<8x384xf32>
    %c0_3 = arith.constant 0 : index
    %c0_4 = arith.constant 0 : index
    %3 = vector.load %arg3[%c0_3, %c0_4] : memref<1x384xf32, #tpu.memory_space<vmem>>, vector<1x384xf32>
    %4 = vector.broadcast %3 : vector<1x384xf32> to vector<8x384xf32>
    %5 = arith.addf %2, %4 : vector<8x384xf32>
    %6 = vector.extract_strided_slice %5 {offsets = [0, 0], sizes = [8, 128], strides = [1, 1]} : vector<8x384xf32> to vector<8x128xf32>
    %7 = vector.extract_strided_slice %5 {offsets = [0, 128], sizes = [8, 128], strides = [1, 1]} : vector<8x384xf32> to vector<8x128xf32>
    %8 = arith.maximumf %6, %7 : vector<8x128xf32>
    %9 = vector.extract_strided_slice %5 {offsets = [0, 256], sizes = [8, 128], strides = [1, 1]} : vector<8x384xf32> to vector<8x128xf32>
    %10 = arith.maximumf %8, %9 : vector<8x128xf32>
    %c0_5 = arith.constant 0 : index
    %c0_6 = arith.constant 0 : index
    %11 = vector.load %arg4[%c0_5, %c0_6] : memref<8x128xf32, #tpu.memory_space<vmem>>, vector<8x128xf32>
    tpu.vector_store %arg4[%c0_5, %c0_6], %10 {strides = array<i32>} : memref<8x128xf32, #tpu.memory_space<vmem>>, vector<8x128xf32>,
    return
  }
  func.func @transform_0(%arg0: i32) -> (i32, i32) {
    %c0_i32 = arith.constant 0 : i32
    %c0_i32_0 = arith.constant 0 : i32
    return %arg0, %c0_i32 : i32, i32
  }
  func.func @transform_1(%arg0: i32) -> (i32, i32) {
    %c0_i32 = arith.constant 0 : i32
    %c0_i32_0 = arith.constant 0 : i32
    %c0_i32_1 = arith.constant 0 : i32
    return %c0_i32, %c0_i32_0 : i32, i32
  }
  func.func @transform_2(%arg0: i32) -> (i32, i32) {
    %c0_i32 = arith.constant 0 : i32
    %c0_i32_0 = arith.constant 0 : i32
    %c0_i32_1 = arith.constant 0 : i32
    return %c0_i32, %c0_i32_0 : i32, i32
  }
  func.func @transform_3(%arg0: i32) -> (i32, i32) {
    %c0_i32 = arith.constant 0 : i32
    %c0_i32_0 = arith.constant 0 : i32
    return %arg0, %c0_i32 : i32, i32
  }
}

</mosaic_0001>

<bundles_post_ra>
// kernel: tpu_custom_call.1
= control target key start
LH: loop header
LB: loop body
LE: loop exit
PB: predicated region body
PF: predicated region fallthrough
CT: control target
= control target key end

     0   :  { %8 = vsyncpa [#allocation3], 0  ;;  %s365_s0 = inlined_call_operand.hbm [shape: f32[8,32], index: 0, kind: input, shape index: {}]   ;;  %s366_s1 = inlined_call_operand.hbm [shape: f32[32,384], index: 1, kind: input, shape index: {}]   ;;  %s367_s2 = inlined_call_operand.vmem [shape: f32[1,384], index: 2, kind: input, shape index: {}]   ;;  %s368_s3 = inlined_call_operand.hbm [shape: f32[8,128], index: 3, kind: output, shape index: {}]  }
   0x1   :  { %9 = vsyncpa [#allocation6], 0 }
   0x2   :  { %10 = vsyncpa [#allocation4], 0  ;;  %s326_s12 = smov [#allocation2]   ;;  %s327_s14 = smov [#allocation5]  }
   0x3   :  { %s17_s13 = sshll.u32 %s326_s12, 4  ;;  %s26_s15 = sshll.u32 %s327_s14, 4  ;;  %s18_s13 = int_to_ptr.vmem [resolvable:$true] %s17_s13  ;;  %s27_s15 = int_to_ptr.vmem [resolvable:$true] %s26_s15 }
   0x4   :  { %s268_s16 = scalar_lea.vmem %s18_s13, 128  ;;  %p273_p1 = scmp.lt.s32.totalorder %s18_s13, %s18_s13 }
   0x5   :  { %p269_p0 = scmp.ne.s32.totalorder %s18_s13, %s268_s16  ;;  %p274_p2 = scmp.lt.s32.totalorder %s268_s16, %s268_s16 }
   0x7   :  { %p275_p3 = por %p274_p2, %p273_p1 }
   0x9   :  { %p276_p4 = pnand %p275_p3, %p269_p0 }
   0xb   :  { %279 = shalt.err (!%p276_p4)
}
   0xc   :  { %20 = dma.hbm_to_vmem [thread:$0]  %s365_s0, 128, %s18_s13, [#allocation3]  }
   0xd   :  { %s288_s19 = scalar_lea.vmem %s27_s15, 1536  ;;  %p293_p6 = scmp.lt.s32.totalorder %s27_s15, %s27_s15 }
   0xe   :  { %p289_p5 = scmp.ne.s32.totalorder %s27_s15, %s288_s19  ;;  %p294_p7 = scmp.lt.s32.totalorder %s288_s19, %s288_s19 }
  0x10   :  { %p295_p8 = por %p294_p7, %p293_p6 }
  0x12   :  { %p296_p9 = pnand %p295_p8, %p289_p5 }
  0x14   :  { %299 = shalt.err (!%p296_p9)
}
  0x15   :  { %s328_s20 = smov 384   ;;  %s329_s21 = smov 24  }
  0x16   :  { %32 = dma.hbm_to_vmem [thread:$0]  %s366_s1, 1536, %s27_s15, [#allocation6], %s328_s20, %s328_s20, %s329_s21  }
  0x17   :  { %320 = dma.done.wait [#allocation3], 128  }
  0x18   :  { %321 = vsyncadd [#allocation3], 4294967168 }
  0x19   :  { %322 = dma.done.wait [#allocation6], 1536  }
  0x1a   :  { %323 = vsyncadd [#allocation6], 4294965760  ;;  %v330_v0 = vmov 0.0   ;;  %vm331_vm0 = vmmov 0   ;;  %v52_v1 = vld [vmem:[#allocation5 + $0x50] sm:$0xff]  ;;  %v51_v2 = vld [vmem:[#allocation5 + $0x48] sm:$0xff]  ;;  %v56_v14 = vlaneseq }
  0x1b   :  { %242 = vmatprep.subr.mxu1 %v330_v0  ;;  %139 = vmatprep.mubr.f32.mxu0 %v330_v0  ;;  %v49_v3 = vld [vmem:[#allocation5 + $0x38] sm:$0xff]  ;;  %v48_v4 = vld [vmem:[#allocation5 + $0x30] sm:$0xff]  ;;  %v46_v6 = vld [vmem:[#allocation5 + $0x20] sm:$0xff]  ;;  %vm71_vm1 = vcmask 261120   ;;  %s332_s24 = smov [#allocation7]  }
  0x1c   :  { %250 = vmatprep.mubr.msk.f32.mxu1 %vm331_vm0, %v330_v0  ;;  %99 = vmatprep.subr.mxu0 %v52_v1  ;;  %v53_v5 = vld [vmem:[#allocation5 + $0x58] sm:$0xff]  ;;  %v50_v7 = vld [vmem:[#allocation5 + $0x40] sm:$0xff]  ;;  %v47_v9 = vld [vmem:[#allocation5 + $0x28] sm:$0xff]  ;;  %v57_v15 = vshrl.u32 %v56_v14, 7  ;;  %s225_s25 = sshll.u32 %s332_s24, 4  ;;  %s226_s25 = int_to_ptr.vmem [resolvable:$true] %s225_s25 }
  0x1d   :  { %100 = vmatpush1.msra.mxu0 %v51_v2  ;;  %243 = vmatpush3.msra.mxu1 %v53_v5  ;;  %v45_v8 = vld [vmem:[#allocation5 + $0x18] sm:$0xff]  ;;  %v43_v10 = vld [vmem:[#allocation5 + $0x8] sm:$0xff]  ;;  %v42_v11 = vld [vmem:[#allocation5] sm:$0xff]  ;;  %s300_s26 = scalar_lea.vmem %s226_s25, 128  ;;  %p305_p11 = scmp.lt.s32.totalorder %s226_s25, %s226_s25 }
  0x1e   :  { %101 = vmatprep.subr.mxu0 %v49_v3  ;;  %244 = vmatprep.subr.mxu1 %v330_v0  ;;  %v44_v12 = vld [vmem:[#allocation5 + $0x10] sm:$0xff]  ;;  %v41_v13 = vld [vmem:[#allocation2] sm:$0xff]  ;;  %v58_v16 = vsub.s32 0, %v57_v15  ;;  %v62_v17 = vsub.s32 1, %v57_v15  ;;  %v66_v18 = vsub.s32 2, %v57_v15  ;;  %p301_p10 = scmp.ne.s32.totalorder %s226_s25, %s300_s26  ;;  %p306_p12 = scmp.lt.s32.totalorder %s300_s26, %s300_s26 }
  0x1f   :  { %102 = vmatpush1.msra.mxu0 %v48_v4  ;;  %245 = vmatpush3.msra.mxu1 %v50_v7  ;;  %v54_v19 = vld [vmem:[%s367_s2] sm:$0x7] }
  0x20   :  { %103 = vmatprep.subr.mxu0 %v46_v6  ;;  %246 = vmatprep.subr.mxu1 %v330_v0  ;;  %v59_v20 = vrot.slane %v54_v19, %v58_v16  ;;  %v63_v21 = vrot.slane %v54_v19, %v62_v17  ;;  %v67_v22 = vrot.slane %v54_v19, %v66_v18  ;;  %p307_p13 = por %p306_p12, %p305_p11 }
  0x21   :  { %104 = vmatpush1.msra.mxu0 %v45_v8  ;;  %247 = vmatpush3.msra.mxu1 %v47_v9 }
  0x22   :  { %105 = vmatprep.subr.mxu0 %v43_v10  ;;  %248 = vmatprep.subr.mxu1 %v330_v0  ;;  %p308_p0 = pnand %p307_p13, %p301_p10 }
  0x23   :  { %106 = vmatpush1.msra.mxu0 %v42_v11  ;;  %249 = vmatpush3.msra.mxu1 %v44_v12 }
  0x24   :  { %235 = vmatmul.mubr.msk.f32.vlgmr.msra.gmra.mxu0 %vm71_vm1, %v41_v13  ;;  %251 = vmatmul.mubr.msk.f32.vlgmr.msra.gmra.mxu1 %vm71_vm1, %v41_v13 }
  0xe4   :  { %v141_v23 = vpop.f32.mrf.mxu0  ;;  %v212_v24 = vpop.f32.mrf.mxu1 }
  0xe5   :  { %v142_v27 = vadd.f32 %v141_v23, %v59_v20  ;;  %v213_v29 = vadd.f32 %v212_v24, %v67_v22 }
  0xe6   :  { %v143_v25 = vpop.f32.mrf.mxu0  ;;  %v252_v26 = vpop.f32.mrf.mxu1 }
  0xe7   :  { %v144_v28 = vadd.f32 %v143_v25, %v63_v21 }
  0xe9   :  { %v216_v30 = vmax.f32 %v142_v27, %v144_v28 }
  0xeb   :  { %v217_v31 = vmax.f32 %v216_v30, %v213_v29 }
  0xed   :  { %218 = vst [vmem:[#allocation7] sm:$0xff] %v217_v31 }
  0xee   :  { %311 = shalt.err (!%p308_p0)
}
  0xef   :  { %228 = dma.vmem_to_hbm [thread:$0]  %s226_s25, 128, %s368_s3, [#allocation4]  }
  0xf0   :  { %324 = dma.done.wait [#allocation4], 128  }
  0xf1   :  { %325 = vsyncadd [#allocation4], 4294967168 }
  0xf2   :  { %232 = vsyncpa [#allocation3], 1 }
  0xf3   :  { %233 = vsyncpa [#allocation6], 1 }
  0xf4   :  { %234 = vsyncpa [#allocation4], 1 }

</bundles_post_ra>
